<compile_context>
chip_gen: v7x
topology: tpu7x:2x2x1
jax: 0.10.0
libtpu: 0.0.40
codegen_flags: <defaults>
</compile_context>

<pallas_src>
import functools

import jax
import jax.numpy as jnp
import numpy as np
from jax import lax
from jax.experimental import pallas as pl
from jax.experimental.pallas import tpu as pltpu

# The 8 one-hot taps of the module's 8x1x3x3 kernel, in PyTorch channel order.
_KERNEL_POSITIONS = ((0, 0), (0, 1), (0, 2),
                     (1, 0),         (1, 2),
                     (2, 0), (2, 1), (2, 2))
# Neighbour offsets (dy, dx) implied by conv2d with replicate pad d, dilation d.
_OFFSETS = tuple((i - 1, j - 1) for (i, j) in _KERNEL_POSITIONS)


def _init_aff():
    """numpy re-creation of the module's one-hot buffer (compile-time const)."""
    w = np.zeros((8, 1, 3, 3), np.float32)
    for n, (i, j) in enumerate(_KERNEL_POSITIONS):
        w[n, 0, i, j] = 1.0
    return w


# Mirror of the module's `weight_check` assertion, done once in numpy at import
# time (bool() on a jnp array breaks under jit and forces a device round trip).
_KERNEL_BUFFER = _init_aff()
assert (_KERNEL_BUFFER.sum(axis=(1, 2, 3)) == 1.0).all()

_MIB = 1024 * 1024


def _vmem_budgets():
    """Generation-aware (vmem_limit_bytes, block_budget, min_total_grid_steps)."""
    try:
        cap = int(pltpu.get_tpu_info().vmem_capacity_bytes)
    except Exception:
        cap = 64 * _MIB                       # conservative (v7x-sized) fallback
    limit = max(cap - 16 * _MIB, 32 * _MIB)   # slack below physical for compiler
    budget = max(limit - 12 * _MIB, 16 * _MIB)  # slack below limit for temps/DMA
    # 64 MiB VMEM => v7x => 2 TensorCores share the grid: want >=2 steps/core so
    # each core's giant output writeback overlaps the next step's compute.
    # 128 MiB parts (v5e/v6e) are single-TC: a floor of 3 steps keeps overlap.
    min_steps = 4 if cap <= 64 * _MIB else 3
    return limit, budget, min_steps


def _choose_block_planes(num_planes, per_plane_bytes, block_budget,
                         sub_pack, min_plane_steps):
    """Planes per grid step: as large as the VMEM block budget allows, rounded
    DOWN to the dtype's sublane pack, and capped so enough plane blocks remain
    for pipeline overlap (and an even split across TensorCores on 2-TC parts)."""
    tb = max(1, block_budget // per_plane_bytes)
    tb = min(tb, num_planes)
    tb = min(tb, max(1, -(-num_planes // min_plane_steps)))   # step floor
    if tb >= sub_pack:
        return (tb // sub_pack) * sub_pack                    # honors the budget
    if num_planes <= sub_pack:
        return num_planes            # full-extent block is always legal
    # Budget / step floor would demand a sub-pack block; legality wins.
    # TODO(synk): add a tap-group grid axis for planes so large that even one
    # sub_pack-row (TB, 8*P) block overflows the VMEM budget.
    return sub_pack


def _local_affinity_kernel(x_ref, o_ref, *, dilations, H, W):
    """x_ref block: (TB, H*W).  o_ref block: (TB, 8*H*W) = one dilation group."""
    P = H * W
    x = x_ref[...]                                        # (TB, P)

    # Boundary masks hoisted once at full (TB, P): jnp.where never re-broadcasts.
    col = lax.broadcasted_iota(jnp.int32, x.shape, 1)
    w_idx = col % W
    at_left = w_idx == 0
    at_right = w_idx == W - 1
    at_top = col < W
    at_bottom = col >= P - W

    # Unit clamped shifts.  pltpu.roll: out[i] = y[(i - shift) mod P].  W | P,
    # so every wrapped lane is a clamped lane -> one roll + one select is exact,
    # and applying the unit shift d times gives the dilation-d clamped shift.
    def up(y):      # dy = -1: out[h, w] = y[max(h - 1, 0), w]
        return jnp.where(at_top, y, pltpu.roll(y, W % P, axis=1))

    def down(y):    # dy = +1: out[h, w] = y[min(h + 1, H - 1), w]
        return jnp.where(at_bottom, y, pltpu.roll(y, (P - W) % P, axis=1))

    def left(y):    # dx = -1: out[h, w] = y[h, max(w - 1, 0)]
        return jnp.where(at_left, y, pltpu.roll(y, 1 % P, axis=1))

    def right(y):   # dx = +1: out[h, w] = y[h, min(w + 1, W - 1)]
        return jnp.where(at_right, y, pltpu.roll(y, (P - 1) % P, axis=1))

    def rep(fn, d, y):
        for _ in range(d):
            y = fn(y)
        return y

    def store(k, v):
        # Full-width lane slice -> unmasked, lane-dense store.  The (optional)
        # dtype cast is VPU work that hides under the output DMA.
        o_ref[:, pl.ds(k * P, P)] = v.astype(o_ref.dtype)

    def emit(d):
        # PyTorch channel order within a dilation group:
        # (-1,-1) (-1,0) (-1,+1) (0,-1) (0,+1) (+1,-1) (+1,0) (+1,+1)
        # Compute/store interleaved: at most ~4 plane temporaries live at once.
        xu = rep(up, d, x)
        store(0, rep(left, d, xu))
        store(1, xu)
        store(2, rep(right, d, xu))
        store(3, rep(left, d, x))
        store(4, rep(right, d, x))
        xd = rep(down, d, x)
        store(5, rep(left, d, xd))
        store(6, xd)
        store(7, rep(right, d, xd))

    if len(dilations) == 1:
        emit(dilations[0])
    else:
        dg = pl.program_id(1)
        for di, d in enumerate(dilations):
            pl.when(dg == di)(functools.partial(emit, d))


def local_affinity(x, dilations=(1,), out_dtype=None):
    """Pallas implementation of LocalAffinity.forward.

    x: (B, K, H, W)  ->  (B, K, 8*len(dilations), H, W)

    out_dtype: optional reduced-precision output (e.g. jnp.bfloat16) to halve
    the dominant HBM writeback; default keeps x.dtype (module semantics).
    """
    B, K, H, W = x.shape
    dilations = tuple(int(d) for d in dilations)
    D = len(dilations)
    BK, P = B * K, H * W
    out_dtype = jnp.dtype(x.dtype if out_dtype is None else out_dtype)

    in_itemsize = jnp.dtype(x.dtype).itemsize
    out_itemsize = out_dtype.itemsize

    vmem_limit, block_budget, min_steps = _vmem_budgets()
    # Per plane per grid step: double-buffered input (P) and output (8*P) blocks
    # plus ~6 plane-sized f32-ish temporaries (x, xu/xd, working shift, masks).
    per_plane_bytes = (2 * in_itemsize + 16 * out_itemsize + 24) * P
    # Sublane pack for the second-minor block dim: 8 f32 / 16 bf16 / 32 int8,
    # taken over both the input and output dtypes.
    sub_pack = (8 * 4) // max(1, min(in_itemsize, out_itemsize))
    min_plane_steps = max(1, -(-min_steps // D))   # the dilation axis already
    TB = _choose_block_planes(BK, per_plane_bytes, block_budget,   # adds D steps
                              sub_pack, min_plane_steps)

    grid = (pl.cdiv(BK, TB), D)                 # plane blocks outer, dilations inner
    xf = x.reshape(BK, P)                       # trailing-dims merge: free reshape
    kernel = functools.partial(_local_affinity_kernel,
                               dilations=dilations, H=H, W=W)
    out = pl.pallas_call(
        kernel,
        out_shape=jax.ShapeDtypeStruct((BK, D * 8 * P), out_dtype),
        grid=grid,
        in_specs=[pl.BlockSpec((TB, P), lambda i, d: (i, 0))],
        out_specs=pl.BlockSpec((TB, 8 * P), lambda i, d: (i, d)),
        compiler_params=pltpu.CompilerParams(
            dimension_semantics=("parallel", "parallel"),
            vmem_limit_bytes=vmem_limit,
        ),
    )(xf)
    return out.reshape(B, K, 8 * D, H, W)


def local_affinity_ref(x, dilations=(1,)):
    """Plain-JAX reference (replicate pad + shifted slices), for checking."""
    B, K, H, W = x.shape
    outs = []
    for d in dilations:
        xp = jnp.pad(x, ((0, 0), (0, 0), (d, d), (d, d)), mode="edge")
        for (dy, dx) in _OFFSETS:
            hs = d + dy * d
            ws = d + dx * d
            outs.append(xp[:, :, hs:hs + H, ws:ws + W])
    return jnp.stack(outs, axis=2)


if __name__ == "__main__":
    key = jax.random.PRNGKey(0)
    B, K, H, W = 2, 4, 16, 16
    dilations = (1, 2)

    x = jax.random.normal(key, (B, K, H, W), dtype=jnp.float32)

    out = jax.block_until_ready(local_affinity(x, dilations))
    assert out.shape == (B, K, 8 * len(dilations), H, W), out.shape

    ref = local_affinity_ref(x, dilations)
    np.testing.assert_allclose(np.asarray(out), np.asarray(ref),
                               rtol=1e-6, atol=1e-6)

    # Reduced-precision output path (writeback-bound kernel => ~2x fewer bytes).
    out_bf16 = jax.block_until_ready(
        local_affinity(x, dilations, out_dtype=jnp.bfloat16))
    assert out_bf16.shape == out.shape and out_bf16.dtype == jnp.bfloat16
    np.testing.assert_allclose(np.asarray(out_bf16, dtype=np.float32),
                               np.asarray(ref), rtol=1e-2, atol=1e-2)

    print("KERNEL_OK")
</pallas_src>

<mosaic_0001>
module attributes {stable_mosaic.version = 11 : i64} {
  func.func @_local_affinity_kernel(%arg0: i32, %arg1: i32, %arg2: memref<8x256xf32, #tpu.memory_space<vmem>>, %arg3: memref<8x2048xf32, #tpu.memory_space<vmem>>) attributes {dimension_semantics = [#tpu.dimension_semantics<parallel>, #tpu.dimension_semantics<parallel>], iteration_bounds = array<i64: 1, 2>, scalar_prefetch = 0 : i64, scratch_operands = 0 : i64, tpu.core_type = #tpu.core_type<tc>, window_params = [{transform_indices = @transform_0, window_bounds = array<i64: 8, 256>}, {transform_indices = @transform_1, window_bounds = array<i64: 8, 2048>}]} {
    %c0 = arith.constant 0 : index
    %c0_0 = arith.constant 0 : index
    %0 = vector.load %arg2[%c0, %c0_0] : memref<8x256xf32, #tpu.memory_space<vmem>>, vector<8x256xf32>
    %1 = tpu.iota {dimensions = array<i32: 1>} : vector<8x256xi32>
    %c16_i32 = arith.constant 16 : i32
    %c0_i32 = arith.constant 0 : i32
    %2 = arith.cmpi eq, %c16_i32, %c0_i32 : i32
    %c1_i32 = arith.constant 1 : i32
    %3 = arith.select %2, %c1_i32, %c16_i32 : i32
    %4 = vector.broadcast %3 : i32 to vector<8x256xi32>
    %5 = arith.remsi %1, %4 : vector<8x256xi32>
    %c0_i32_1 = arith.constant 0 : i32
    %6 = vector.broadcast %c0_i32_1 : i32 to vector<8x256xi32>
    %7 = arith.cmpi ne, %5, %6 : vector<8x256xi32>
    %c0_i32_2 = arith.constant 0 : i32
    %8 = vector.broadcast %c0_i32_2 : i32 to vector<8x256xi32>
    %9 = arith.cmpi slt, %5, %8 : vector<8x256xi32>
    %c0_i32_3 = arith.constant 0 : i32
    %10 = arith.cmpi slt, %3, %c0_i32_3 : i32
    %11 = vector.broadcast %10 : i1 to vector<8x256xi1>
    %12 = vector.broadcast %11 : vector<8x256xi1> to vector<8x256xi1>
    %13 = arith.xori %9, %12 : vector<8x256xi1>
    %14 = arith.andi %13, %7 : vector<8x256xi1>
    %15 = vector.broadcast %3 : i32 to vector<8x256xi32>
    %16 = arith.addi %5, %15 : vector<8x256xi32>
    %17 = arith.select %14, %16, %5 : vector<8x256xi1>, vector<8x256xi32>
    %c0_i32_4 = arith.constant 0 : i32
    %18 = vector.broadcast %c0_i32_4 : i32 to vector<8x256xi32>
    %19 = arith.cmpi eq, %17, %18 : vector<8x256xi32>
    %c15_i32 = arith.constant 15 : i32
    %20 = vector.broadcast %c15_i32 : i32 to vector<8x256xi32>
    %21 = arith.cmpi eq, %17, %20 : vector<8x256xi32>
    %c16_i32_5 = arith.constant 16 : i32
    %22 = vector.broadcast %c16_i32_5 : i32 to vector<8x256xi32>
    %23 = arith.cmpi slt, %1, %22 : vector<8x256xi32>
    %c240_i32 = arith.constant 240 : i32
    %24 = vector.broadcast %c240_i32 : i32 to vector<8x256xi32>
    %25 = arith.cmpi sge, %1, %24 : vector<8x256xi32>
    %c0_i32_6 = arith.constant 0 : i32
    %26 = arith.cmpi eq, %arg1, %c0_i32_6 : i32
    %27 = arith.extui %26 : i1 to i32
    %c0_i32_7 = arith.constant 0 : i32
    %28 = arith.cmpi ne, %27, %c0_i32_7 : i32
    scf.if %28 {
      %c16_i32_10 = arith.constant 16 : i32
      %32 = tpu.dynamic_rotate %0 by %c16_i32_10 dim 1 : vector<8x256xf32>, i32 -> vector<8x256xf32>
      %33 = arith.select %23, %0, %32 : vector<8x256xi1>, vector<8x256xf32>
      %c1_i32_11 = arith.constant 1 : i32
      %34 = tpu.dynamic_rotate %33 by %c1_i32_11 dim 1 : vector<8x256xf32>, i32 -> vector<8x256xf32>
      %35 = arith.select %19, %33, %34 : vector<8x256xi1>, vector<8x256xf32>
      %c0_12 = arith.constant 0 : index
      %c0_13 = arith.constant 0 : index
      %36 = vector.load %arg3[%c0_12, %c0_13] : memref<8x2048xf32, #tpu.memory_space<vmem>>, vector<8x256xf32>
      tpu.vector_store %arg3[%c0_12, %c0_13], %35 {strides = array<i32>} : memref<8x2048xf32, #tpu.memory_space<vmem>>, vector<8x256xf32>,
      %c0_14 = arith.constant 0 : index
      %c256 = arith.constant 256 : index
      %37 = vector.load %arg3[%c0_14, %c256] : memref<8x2048xf32, #tpu.memory_space<vmem>>, vector<8x256xf32>
      tpu.vector_store %arg3[%c0_14, %c256], %33 {strides = array<i32>} : memref<8x2048xf32, #tpu.memory_space<vmem>>, vector<8x256xf32>,
      %c255_i32 = arith.constant 255 : i32
      %38 = tpu.dynamic_rotate %33 by %c255_i32 dim 1 : vector<8x256xf32>, i32 -> vector<8x256xf32>
      %39 = arith.select %21, %33, %38 : vector<8x256xi1>, vector<8x256xf32>
      %c0_15 = arith.constant 0 : index
      %c512 = arith.constant 512 : index
      %40 = vector.load %arg3[%c0_15, %c512] : memref<8x2048xf32, #tpu.memory_space<vmem>>, vector<8x256xf32>
      tpu.vector_store %arg3[%c0_15, %c512], %39 {strides = array<i32>} : memref<8x2048xf32, #tpu.memory_space<vmem>>, vector<8x256xf32>,
      %c1_i32_16 = arith.constant 1 : i32
      %41 = tpu.dynamic_rotate %0 by %c1_i32_16 dim 1 : vector<8x256xf32>, i32 -> vector<8x256xf32>
      %42 = arith.select %19, %0, %41 : vector<8x256xi1>, vector<8x256xf32>
      %c0_17 = arith.constant 0 : index
      %c768 = arith.constant 768 : index
      %43 = vector.load %arg3[%c0_17, %c768] : memref<8x2048xf32, #tpu.memory_space<vmem>>, vector<8x256xf32>
      tpu.vector_store %arg3[%c0_17, %c768], %42 {strides = array<i32>} : memref<8x2048xf32, #tpu.memory_space<vmem>>, vector<8x256xf32>,
      %c255_i32_18 = arith.constant 255 : i32
      %44 = tpu.dynamic_rotate %0 by %c255_i32_18 dim 1 : vector<8x256xf32>, i32 -> vector<8x256xf32>
      %45 = arith.select %21, %0, %44 : vector<8x256xi1>, vector<8x256xf32>
      %c0_19 = arith.constant 0 : index
      %c1024 = arith.constant 1024 : index
      %46 = vector.load %arg3[%c0_19, %c1024] : memref<8x2048xf32, #tpu.memory_space<vmem>>, vector<8x256xf32>
      tpu.vector_store %arg3[%c0_19, %c1024], %45 {strides = array<i32>} : memref<8x2048xf32, #tpu.memory_space<vmem>>, vector<8x256xf32>,
      %c240_i32_20 = arith.constant 240 : i32
      %47 = tpu.dynamic_rotate %0 by %c240_i32_20 dim 1 : vector<8x256xf32>, i32 -> vector<8x256xf32>
      %48 = arith.select %25, %0, %47 : vector<8x256xi1>, vector<8x256xf32>
      %c1_i32_21 = arith.constant 1 : i32
      %49 = tpu.dynamic_rotate %48 by %c1_i32_21 dim 1 : vector<8x256xf32>, i32 -> vector<8x256xf32>
      %50 = arith.select %19, %48, %49 : vector<8x256xi1>, vector<8x256xf32>
      %c0_22 = arith.constant 0 : index
      %c1280 = arith.constant 1280 : index
      %51 = vector.load %arg3[%c0_22, %c1280] : memref<8x2048xf32, #tpu.memory_space<vmem>>, vector<8x256xf32>
      tpu.vector_store %arg3[%c0_22, %c1280], %50 {strides = array<i32>} : memref<8x2048xf32, #tpu.memory_space<vmem>>, vector<8x256xf32>,
      %c0_23 = arith.constant 0 : index
      %c1536 = arith.constant 1536 : index
      %52 = vector.load %arg3[%c0_23, %c1536] : memref<8x2048xf32, #tpu.memory_space<vmem>>, vector<8x256xf32>
      tpu.vector_store %arg3[%c0_23, %c1536], %48 {strides = array<i32>} : memref<8x2048xf32, #tpu.memory_space<vmem>>, vector<8x256xf32>,
      %c255_i32_24 = arith.constant 255 : i32
      %53 = tpu.dynamic_rotate %48 by %c255_i32_24 dim 1 : vector<8x256xf32>, i32 -> vector<8x256xf32>
      %54 = arith.select %21, %48, %53 : vector<8x256xi1>, vector<8x256xf32>
      %c0_25 = arith.constant 0 : index
      %c1792 = arith.constant 1792 : index
      %55 = vector.load %arg3[%c0_25, %c1792] : memref<8x2048xf32, #tpu.memory_space<vmem>>, vector<8x256xf32>
      tpu.vector_store %arg3[%c0_25, %c1792], %54 {strides = array<i32>} : memref<8x2048xf32, #tpu.memory_space<vmem>>, vector<8x256xf32>,
    } else {
    }
    %c1_i32_8 = arith.constant 1 : i32
    %29 = arith.cmpi eq, %arg1, %c1_i32_8 : i32
    %30 = arith.extui %29 : i1 to i32
    %c0_i32_9 = arith.constant 0 : i32
    %31 = arith.cmpi ne, %30, %c0_i32_9 : i32
    scf.if %31 {
      %c16_i32_10 = arith.constant 16 : i32
      %32 = tpu.dynamic_rotate %0 by %c16_i32_10 dim 1 : vector<8x256xf32>, i32 -> vector<8x256xf32>
      %33 = arith.select %23, %0, %32 : vector<8x256xi1>, vector<8x256xf32>
      %c16_i32_11 = arith.constant 16 : i32
      %34 = tpu.dynamic_rotate %33 by %c16_i32_11 dim 1 : vector<8x256xf32>, i32 -> vector<8x256xf32>
      %35 = arith.select %23, %33, %34 : vector<8x256xi1>, vector<8x256xf32>
      %c1_i32_12 = arith.constant 1 : i32
      %36 = tpu.dynamic_rotate %35 by %c1_i32_12 dim 1 : vector<8x256xf32>, i32 -> vector<8x256xf32>
      %37 = arith.select %19, %35, %36 : vector<8x256xi1>, vector<8x256xf32>
      %c1_i32_13 = arith.constant 1 : i32
      %38 = tpu.dynamic_rotate %37 by %c1_i32_13 dim 1 : vector<8x256xf32>, i32 -> vector<8x256xf32>
      %39 = arith.select %19, %37, %38 : vector<8x256xi1>, vector<8x256xf32>
      %c0_14 = arith.constant 0 : index
      %c0_15 = arith.constant 0 : index
      %40 = vector.load %arg3[%c0_14, %c0_15] : memref<8x2048xf32, #tpu.memory_space<vmem>>, vector<8x256xf32>
      tpu.vector_store %arg3[%c0_14, %c0_15], %39 {strides = array<i32>} : memref<8x2048xf32, #tpu.memory_space<vmem>>, vector<8x256xf32>,
      %c0_16 = arith.constant 0 : index
      %c256 = arith.constant 256 : index
      %41 = vector.load %arg3[%c0_16, %c256] : memref<8x2048xf32, #tpu.memory_space<vmem>>, vector<8x256xf32>
      tpu.vector_store %arg3[%c0_16, %c256], %35 {strides = array<i32>} : memref<8x2048xf32, #tpu.memory_space<vmem>>, vector<8x256xf32>,
      %c255_i32 = arith.constant 255 : i32
      %42 = tpu.dynamic_rotate %35 by %c255_i32 dim 1 : vector<8x256xf32>, i32 -> vector<8x256xf32>
      %43 = arith.select %21, %35, %42 : vector<8x256xi1>, vector<8x256xf32>
      %c255_i32_17 = arith.constant 255 : i32
      %44 = tpu.dynamic_rotate %43 by %c255_i32_17 dim 1 : vector<8x256xf32>, i32 -> vector<8x256xf32>
      %45 = arith.select %21, %43, %44 : vector<8x256xi1>, vector<8x256xf32>
      %c0_18 = arith.constant 0 : index
      %c512 = arith.constant 512 : index
      %46 = vector.load %arg3[%c0_18, %c512] : memref<8x2048xf32, #tpu.memory_space<vmem>>, vector<8x256xf32>
      tpu.vector_store %arg3[%c0_18, %c512], %45 {strides = array<i32>} : memref<8x2048xf32, #tpu.memory_space<vmem>>, vector<8x256xf32>,
      %c1_i32_19 = arith.constant 1 : i32
      %47 = tpu.dynamic_rotate %0 by %c1_i32_19 dim 1 : vector<8x256xf32>, i32 -> vector<8x256xf32>
      %48 = arith.select %19, %0, %47 : vector<8x256xi1>, vector<8x256xf32>
      %c1_i32_20 = arith.constant 1 : i32
      %49 = tpu.dynamic_rotate %48 by %c1_i32_20 dim 1 : vector<8x256xf32>, i32 -> vector<8x256xf32>
      %50 = arith.select %19, %48, %49 : vector<8x256xi1>, vector<8x256xf32>
      %c0_21 = arith.constant 0 : index
      %c768 = arith.constant 768 : index
      %51 = vector.load %arg3[%c0_21, %c768] : memref<8x2048xf32, #tpu.memory_space<vmem>>, vector<8x256xf32>
      tpu.vector_store %arg3[%c0_21, %c768], %50 {strides = array<i32>} : memref<8x2048xf32, #tpu.memory_space<vmem>>, vector<8x256xf32>,
      %c255_i32_22 = arith.constant 255 : i32
      %52 = tpu.dynamic_rotate %0 by %c255_i32_22 dim 1 : vector<8x256xf32>, i32 -> vector<8x256xf32>
      %53 = arith.select %21, %0, %52 : vector<8x256xi1>, vector<8x256xf32>
      %c255_i32_23 = arith.constant 255 : i32
      %54 = tpu.dynamic_rotate %53 by %c255_i32_23 dim 1 : vector<8x256xf32>, i32 -> vector<8x256xf32>
      %55 = arith.select %21, %53, %54 : vector<8x256xi1>, vector<8x256xf32>
      %c0_24 = arith.constant 0 : index
      %c1024 = arith.constant 1024 : index
      %56 = vector.load %arg3[%c0_24, %c1024] : memref<8x2048xf32, #tpu.memory_space<vmem>>, vector<8x256xf32>
      tpu.vector_store %arg3[%c0_24, %c1024], %55 {strides = array<i32>} : memref<8x2048xf32, #tpu.memory_space<vmem>>, vector<8x256xf32>,
      %c240_i32_25 = arith.constant 240 : i32
      %57 = tpu.dynamic_rotate %0 by %c240_i32_25 dim 1 : vector<8x256xf32>, i32 -> vector<8x256xf32>
      %58 = arith.select %25, %0, %57 : vector<8x256xi1>, vector<8x256xf32>
      %c240_i32_26 = arith.constant 240 : i32
      %59 = tpu.dynamic_rotate %58 by %c240_i32_26 dim 1 : vector<8x256xf32>, i32 -> vector<8x256xf32>
      %60 = arith.select %25, %58, %59 : vector<8x256xi1>, vector<8x256xf32>
      %c1_i32_27 = arith.constant 1 : i32
      %61 = tpu.dynamic_rotate %60 by %c1_i32_27 dim 1 : vector<8x256xf32>, i32 -> vector<8x256xf32>
      %62 = arith.select %19, %60, %61 : vector<8x256xi1>, vector<8x256xf32>
      %c1_i32_28 = arith.constant 1 : i32
      %63 = tpu.dynamic_rotate %62 by %c1_i32_28 dim 1 : vector<8x256xf32>, i32 -> vector<8x256xf32>
      %64 = arith.select %19, %62, %63 : vector<8x256xi1>, vector<8x256xf32>
      %c0_29 = arith.constant 0 : index
      %c1280 = arith.constant 1280 : index
      %65 = vector.load %arg3[%c0_29, %c1280] : memref<8x2048xf32, #tpu.memory_space<vmem>>, vector<8x256xf32>
      tpu.vector_store %arg3[%c0_29, %c1280], %64 {strides = array<i32>} : memref<8x2048xf32, #tpu.memory_space<vmem>>, vector<8x256xf32>,
      %c0_30 = arith.constant 0 : index
      %c1536 = arith.constant 1536 : index
      %66 = vector.load %arg3[%c0_30, %c1536] : memref<8x2048xf32, #tpu.memory_space<vmem>>, vector<8x256xf32>
      tpu.vector_store %arg3[%c0_30, %c1536], %60 {strides = array<i32>} : memref<8x2048xf32, #tpu.memory_space<vmem>>, vector<8x256xf32>,
      %c255_i32_31 = arith.constant 255 : i32
      %67 = tpu.dynamic_rotate %60 by %c255_i32_31 dim 1 : vector<8x256xf32>, i32 -> vector<8x256xf32>
      %68 = arith.select %21, %60, %67 : vector<8x256xi1>, vector<8x256xf32>
      %c255_i32_32 = arith.constant 255 : i32
      %69 = tpu.dynamic_rotate %68 by %c255_i32_32 dim 1 : vector<8x256xf32>, i32 -> vector<8x256xf32>
      %70 = arith.select %21, %68, %69 : vector<8x256xi1>, vector<8x256xf32>
      %c0_33 = arith.constant 0 : index
      %c1792 = arith.constant 1792 : index
      %71 = vector.load %arg3[%c0_33, %c1792] : memref<8x2048xf32, #tpu.memory_space<vmem>>, vector<8x256xf32>
      tpu.vector_store %arg3[%c0_33, %c1792], %70 {strides = array<i32>} : memref<8x2048xf32, #tpu.memory_space<vmem>>, vector<8x256xf32>,
    } else {
    }
    return
  }
  func.func @transform_0(%arg0: i32, %arg1: i32) -> (i32, i32) {
    %c0_i32 = arith.constant 0 : i32
    %c0_i32_0 = arith.constant 0 : i32
    return %arg0, %c0_i32 : i32, i32
  }
  func.func @transform_1(%arg0: i32, %arg1: i32) -> (i32, i32) {
    %c0_i32 = arith.constant 0 : i32
    return %arg0, %arg1 : i32, i32
  }
}

</mosaic_0001>

<bundles_post_ra>
// kernel: tpu_custom_call.1
= control target key start
LH: loop header
LB: loop body
LE: loop exit
PB: predicated region body
PF: predicated region fallthrough
CT: control target
= control target key end

     0   :  { %6 = vsyncpa [#allocation3], 0  ;;  %s1227_s0 = inlined_call_operand.hbm [shape: f32[8,256], index: 0, kind: input, shape index: {}]   ;;  %s1228_s1 = inlined_call_operand.hbm [shape: f32[8,4096], index: 1, kind: output, shape index: {}]  }
   0x1   :  { %7 = vsyncpa [#allocation4], 0 }
   0x2   :  { %9 = vsyncpa [#allocation4 + $0x1], 0  ;;  %s716_s6 = smov 0   ;;  %s718_s7 = smov 0  }
   0x3   :  { %s720_s8 = smov 0   ;;  %s722_s9 = smov 0  }
   0x4   :  { %s724_s10 = smov 0   ;;  %s726_s11 = smov 0  }
   0x5 LB: > { %s495_s12 = sadd.s32 4294967295, %s694_s11   ;;  %s496_s13 = sadd.s32 4294967294, %s694_s11   ;;  %s694_s11 = sphi %s726_s11, %s15_s11   ;;  %s690_s10 = sphi %s724_s10, %s1254_s10   ;;  %s686_s9 = sphi %s722_s9, %s1253_s9   ;;  %s682_s8 = sphi %s720_s8, %s1252_s8   ;;  %s678_s7 = sphi %s718_s7, %s1251_s7   ;;  %s674_s6 = sphi %s716_s6, %s1250_s6  }
   0x6   : > { %s24_s14 = sadd.s32 1, %s690_s10  ;;  %s62_s15 = sadd.s32 1, %s682_s8 }
   0x7   : > { %p25_p0 = scmp.ge.s32.totalorder %s24_s14, 2  ;;  %p72_p1 = scmp.ne.s32.totalorder %s682_s8, %s678_s7 }
   0x8   : > { %p73_p2 = scmp.eq.s32.totalorder %s495_s12, 1  ;;  %p78_p3 = scmp.ne.s32.totalorder %s678_s7, %s674_s6 }
   0x9   : > { %s1256_s14 = smov (%p25_p0, %s24_s14), 0  ;;  %p79_p5 = scmp.eq.s32.totalorder %s496_s13, 1 }
   0xa   : > { %p756_p4 = por %p73_p2, %p72_p1  ;;  %s58_s17 = ssub.s32 %s690_s10, %s1256_s14 }
   0xb   : > { %p497_p6 = scmp.ge.s32.totalorder %s694_s11, 1  ;;  %p60_p7 = scmp.eq.s32.totalorder %s58_s17, 0 }
   0xc   : > { %s1233_s16 = scalar_select %p756_p4, 1, 0 }
   0xd   : > { %p763_p8 = por %p79_p5, %p78_p3  ;;  %p86_p9 = scmp.lt.s32.totalorder %s694_s11, 3 }
   0xe   : > { %s769_s19 = scalar_select %p60_p7, %s682_s8, %s62_s15  }
   0xf   : > { %s1234_s18 = scalar_select %p763_p8, 1, 0 }
  0x10   : > { %p771_p10 = pnand %p497_p6, %p86_p9  ;;  %p775_p11 = scmp.eq.s32.totalorder %s495_s12, 0 }
  0x11   : > { %s696_s22 = smov [#allocation2]   ;;  %s584_s27 = scalar_lea.hbm %s1227_s0, 256 }
  0x12   : > { %s1235_s20 = scalar_select %p771_p10, 1, 0 }
  0x13   : > { %s1236_s21 = scalar_select %p775_p11, 1, 0 }
  0x14   : > { %p516_p12 = pneg %p771_p10  ;;  %s102_s23 = sshll.u32 %s696_s22, 4  ;;  %s103_s23 = int_to_ptr.vmem [resolvable:$true] %s102_s23 }
  0x15   : > { %p585_p0 = scmp.ne.s32.totalorder %s1227_s0, %s584_s27  ;;  %p591_p5 = scmp.lt.u32.totalorder %s584_s27, %s1227_s0 }
  0x16   : > { %p783_p13 = pnand %p775_p11, %p516_p12 }
  0x18   : > { %p586_p1 = pneg %p783_p13 }
  0x1a   : > { %p587_p2 = pnand %p586_p1, %p585_p0 }
  0x1c   : > { %p588_p3 = pneg %p587_p2 }
  0x1e   : > { %p593_p6 = pnand %p591_p5, %p588_p3 }
  0x20   : > { %596 = shalt.err (!%p593_p6)
}
  0x21   : > { %s597_s3 = scalar_lea.vmem %s103_s23, 256  ;;  %p605_p8 = scmp.lt.s32.totalorder %s103_s23, %s103_s23 }
  0x22   : > { %p598_p7 = scmp.ne.s32.totalorder %s103_s23, %s597_s3  ;;  %p606_p4 = scmp.lt.s32.totalorder %s597_s3, %s597_s3 }
  0x24   : > { %p600_p9 = pnand %p598_p7, %p586_p1  ;;  %p607_p11 = por %p606_p4, %p605_p8 }
  0x26   : > { %p601_p12 = pneg %p600_p9 }
  0x28   : > { %p608_p10 = pnand %p607_p11, %p601_p12 }
  0x2a   : > { %611 = shalt.err (!%p608_p10)
}
  0x2b   : > { %519 = dma.hbm_to_vmem [thread:$0]  (!%p783_p13), %s1227_s0, 256, %s103_s23, [#allocation3]  }
  0x2c   : > { %p1238_p0 = scmp.ne.s32.totalorder %s1235_s20, 0 }
  0x2d   : > { %p1239_p2 = scmp.ne.s32.totalorder (!%p1238_p0), %s1236_s21, 0 }
  0x2e   : > { %115 = sbr.rel (%p1238_p0) target bundleno = 827 (0x33b), region = 24 }
  0x35   : > { %665 = dma.done.wait (%p1239_p2), [#allocation3], 256  }
  0x36   : > { %667 = vsyncadd (%p1239_p2), [#allocation3], 4294967040  ;;  %s127_s12 = sand.u32 1, %s678_s7   ;;  %v133_v0 = vlaneseq  ;;  %v829_v7 = vld [vmem:[#allocation2] sm:$0xff]  ;;  %v831_v8 = vld [vmem:[#allocation2 + $0x8] sm:$0xff]  ;;  %p502_p4 = scmp.ne.s32.totalorder %s686_s9, 0 }
  0x37   : > { %s501_s13 = sshll.u32 %s127_s12, 7  ;;  %s697_s17 = smov (!%p502_p4), 112  }
  0x38   : > { %v812_v1 = vand.u32 127, %v133_v0  ;;  %s841_s15 = scalar_lea.vmem [#allocation5], %s501_s13  ;;  %171 = sbr.rel (%p502_p4) target bundleno = 308 (0x134), region = 32  ;;  %224 = vrot.lane.b32.xlu1 (!%p502_p4), %v829_v7, %s697_s17 }
  0x39   : > { %s698_s20 = smov (!%p502_p4), 16   ;;  %s699_s21 = smov (!%p502_p4), 1  }
  0x3a   : > { %v815_v2 = vadd.s32 128, %v812_v1  ;;  %v140_v3 = vand.u32 15, %v812_v1  ;;  %vm164_vm0 = vcmp.lt.s32.totalorder %v812_v1, 16  ;;  %172 = vrot.lane.b32.xlu0 (!%p502_p4), %v829_v7, %s698_s20  ;;  %s700_s22 = smov (!%p502_p4), 127   ;;  %vm228_vm6 = vcmp.lt.s32.totalorder (!%p502_p4), %v812_v1, 112 }
  0x3b   : > { %vm184_vm7 = vcmp.lt.s32.totalorder (!%p502_p4), %v812_v1, 1  ;;  %vm197_vm8 = vcmp.lt.s32.totalorder (!%p502_p4), %v812_v1, 127 }
  0x3c   : > { %v147_v4 = vand.u32 15, %v815_v2  ;;  %vm820_vm1 = vcmp.eq.s32.totalorder %v140_v3, 0  ;;  %vm824_vm2 = vcmp.eq.s32.totalorder %v140_v3, 15  ;;  %vm167_vm3 = vcmp.ge.s32.totalorder %v815_v2, 240  ;;  %226 = vrot.lane.b32.xlu1 (!%p502_p4), %v831_v8, %s697_s17 }
  0x3e   : > { %vm833_vm4 = vcmp.eq.s32.totalorder %v147_v4, 0  ;;  %vm837_vm5 = vcmp.eq.s32.totalorder %v147_v4, 15  ;;  %174 = vrot.lane.b32.xlu0 (!%p502_p4), %v831_v8, %s698_s20 }
  0x40   : > { %206 = vrot.lane.b32.xlu1 %v831_v8, %s699_s21 }
  0x42   : > { %204 = vrot.lane.b32.xlu0 %v829_v7, %s699_s21 }
  0x44   : > { %216 = vrot.lane.b32.xlu1 %v831_v8, %s700_s22 }
  0x46   : > { %214 = vrot.lane.b32.xlu0 %v829_v7, %s700_s22 }
  0xaa   : > { %v225_v11 = vpop.permute.xlu1 %224 }
  0xac   : > { %v173_v12 = vpop.permute.xlu0 %172 }
  0xae   : > { %v227_v13 = vpop.permute.xlu1 %226 }
  0xaf   : > { %v857_v15 = vsel %vm228_vm6, %v225_v11, %v227_v13  ;;  %v230_v16 = vsel %vm228_vm6, %v227_v13, %v225_v11 }
  0xb0   : > { %v175_v14 = vpop.permute.xlu0 %174  ;;  %v866_v19 = vsel %vm167_vm3, %v831_v8, %v230_v16  ;;  %243 = vst [vmem:[%s841_s15 + $0x60] sm:$0xff] %v857_v15  ;;  %233 = vrot.lane.b32.xlu0 %v857_v15, %s699_s21 }
  0xb1   : > { %v176_v17 = vsel %vm164_vm0, %v173_v12, %v175_v14  ;;  %v177_v18 = vsel %vm164_vm0, %v175_v14, %v173_v12  ;;  %244 = vst [vmem:[%s841_s15 + $0x68] sm:$0xff] %v866_v19 }
  0xb2   : > { %v178_v20 = vsel %vm164_vm0, %v829_v7, %v177_v18  ;;  %192 = vst [vmem:[%s841_s15 + $0x18] sm:$0xff] %v176_v17  ;;  %182 = vrot.lane.b32.xlu1 %v176_v17, %s699_s21  ;;  %v207_v21 = vpop.permute.xlu1 %206 }
  0xb3   : > { %191 = vst [vmem:[%s841_s15 + $0x10] sm:$0xff] %v178_v20 }
  0xb4   : > { %v205_v22 = vpop.permute.xlu0 %204  ;;  %180 = vrot.lane.b32.xlu0 %v178_v20, %s699_s21 }
  0xb5   : > { %v208_v23 = vsel %vm184_vm7, %v205_v22, %v207_v21  ;;  %v209_v24 = vsel %vm184_vm7, %v207_v21, %v205_v22 }
  0xb6   : > { %195 = vrot.lane.b32.xlu1 %v176_v17, %s700_s22  ;;  %v210_v25 = vsel %vm820_vm1, %v829_v7, %v209_v24  ;;  %v211_v26 = vsel %vm833_vm4, %v831_v8, %v208_v23  ;;  %v217_v27 = vpop.permute.xlu1 %216 }
  0xb7   : > { %212 = vst [vmem:[%s841_s15 + $0x30] sm:$0xff] %v210_v25  ;;  %213 = vst [vmem:[%s841_s15 + $0x38] sm:$0xff] %v211_v26 }
  0xb8   : > { %v215_v28 = vpop.permute.xlu0 %214  ;;  %193 = vrot.lane.b32.xlu0 %v178_v20, %s700_s22 }
  0xb9   : > { %v218_v29 = vsel %vm197_vm8, %v215_v28, %v217_v27  ;;  %v219_v30 = vsel %vm197_vm8, %v217_v27, %v215_v28 }
  0xba   : > { %235 = vrot.lane.b32.xlu1 %v866_v19, %s699_s21  ;;  %v220_v31 = vsel %vm824_vm2, %v829_v7, %v218_v29  ;;  %v221_v32 = vsel %vm837_vm5, %v831_v8, %v219_v30 }
  0xbb   : > { %222 = vst [vmem:[%s841_s15 + $0x40] sm:$0xff] %v220_v31  ;;  %223 = vst [vmem:[%s841_s15 + $0x48] sm:$0xff] %v221_v32 }
  0xbc   : > { %245 = vrot.lane.b32.xlu0 %v857_v15, %s700_s22 }
  0xbe   : > { %247 = vrot.lane.b32.xlu1 %v866_v19, %s700_s22 }
 0x122   : > { %v234_v34 = vpop.permute.xlu0 %233 }
 0x124   : > { %v183_v33 = vpop.permute.xlu1 %182 }
 0x126   : > { %v181_v36 = vpop.permute.xlu0 %180 }
 0x127   : > { %v185_v37 = vsel %vm184_vm7, %v181_v36, %v183_v33  ;;  %v186_v38 = vsel %vm184_vm7, %v183_v33, %v181_v36 }
 0x128   : > { %v196_v35 = vpop.permute.xlu1 %195  ;;  %v187_v39 = vsel %vm820_vm1, %v178_v20, %v186_v38  ;;  %v188_v40 = vsel %vm833_vm4, %v176_v17, %v185_v37 }
 0x129   : > { %189 = vst [vmem:[%s841_s15] sm:$0xff] %v187_v39  ;;  %190 = vst [vmem:[%s841_s15 + $0x8] sm:$0xff] %v188_v40 }
 0x12a   : > { %v194_v42 = vpop.permute.xlu0 %193 }
 0x12b   : > { %v198_v45 = vsel %vm197_vm8, %v194_v42, %v196_v35  ;;  %v199_v46 = vsel %vm197_vm8, %v196_v35, %v194_v42 }
 0x12c   : > { %v236_v41 = vpop.permute.xlu1 %235  ;;  %v200_v49 = vsel %vm824_vm2, %v178_v20, %v198_v45  ;;  %v201_v50 = vsel %vm837_vm5, %v176_v17, %v199_v46 }
 0x12d   : > { %v237_v43 = vsel %vm184_vm7, %v234_v34, %v236_v41  ;;  %v238_v44 = vsel %vm184_vm7, %v236_v41, %v234_v34  ;;  %202 = vst [vmem:[%s841_s15 + $0x20] sm:$0xff] %v200_v49  ;;  %203 = vst [vmem:[%s841_s15 + $0x28] sm:$0xff] %v201_v50 }
 0x12e   : > { %v239_v47 = vsel %vm820_vm1, %v857_v15, %v238_v44  ;;  %v240_v48 = vsel %vm833_vm4, %v866_v19, %v237_v43  ;;  %v246_v52 = vpop.permute.xlu0 %245 }
 0x12f   : > { %241 = vst [vmem:[%s841_s15 + $0x50] sm:$0xff] %v239_v47  ;;  %242 = vst [vmem:[%s841_s15 + $0x58] sm:$0xff] %v240_v48 }
 0x130   : > { %v248_v51 = vpop.permute.xlu1 %247 }
 0x131   : > { %v249_v53 = vsel %vm197_vm8, %v246_v52, %v248_v51  ;;  %v250_v54 = vsel %vm197_vm8, %v248_v51, %v246_v52 }
 0x132   : > { %v251_v55 = vsel %vm824_vm2, %v857_v15, %v249_v53  ;;  %v252_v56 = vsel %vm837_vm5, %v866_v19, %v250_v54 }
 0x133   : > { %253 = vst [vmem:[%s841_s15 + $0x70] sm:$0xff] %v251_v55  ;;  %254 = vst [vmem:[%s841_s15 + $0x78] sm:$0xff] %v252_v56 }
 0x134 PF: > { %p503_p8 = scmp.ne.s32.totalorder %s686_s9, 1 }
 0x135   : > { %s701_s23 = smov (!%p503_p8), 112   ;;  %s702_s24 = smov (!%p503_p8), 16   ;;  %vm355_vm9 = vcmp.lt.s32.totalorder (!%p503_p8), %v812_v1, 112  ;;  %vm279_vm10 = vcmp.lt.s32.totalorder (!%p503_p8), %v812_v1, 1  ;;  %vm300_vm11 = vcmp.lt.s32.totalorder (!%p503_p8), %v812_v1, 127 }
 0x136   : > { %258 = sbr.rel (%p503_p8) target bundleno = 802 (0x322), region = 36  ;;  %351 = vrot.lane.b32.xlu1 (!%p503_p8), %v829_v7, %s701_s23  ;;  %259 = vrot.lane.b32.xlu0 (!%p503_p8), %v829_v7, %s702_s24  ;;  %s703_s25 = smov (!%p503_p8), 1  }
 0x137   : > { %s704_s26 = smov (!%p503_p8), 127  }
 0x13a   : > { %353 = vrot.lane.b32.xlu1 (!%p503_p8), %v831_v8, %s701_s23  ;;  %261 = vrot.lane.b32.xlu0 (!%p503_p8), %v831_v8, %s702_s24 }
 0x1a8   : > { %v352_v57 = vpop.permute.xlu1 %351  ;;  %v260_v58 = vpop.permute.xlu0 %259 }
 0x1ac   : > { %v354_v59 = vpop.permute.xlu1 %353  ;;  %v262_v60 = vpop.permute.xlu0 %261 }
 0x1ad   : > { %v264_v61 = vsel %vm164_vm0, %v262_v60, %v260_v58  ;;  %v263_v62 = vsel %vm164_vm0, %v260_v58, %v262_v60  ;;  %v357_v63 = vsel %vm355_vm9, %v354_v59, %v352_v57  ;;  %v356_v4 = vsel %vm355_vm9, %v352_v57, %v354_v59 }
 0x1ae   : > { %269 = vrot.lane.b32.xlu1 %v263_v62, %s702_s24  ;;  %v265_v0 = vsel %vm164_vm0, %v829_v7, %v264_v61  ;;  %v359_v3 = vsel %vm167_vm3, %v831_v8, %v357_v63 }
 0x1af   : > { %267 = vrot.lane.b32.xlu0 %v265_v0, %s702_s24 }
 0x1b2   : > { %362 = vrot.lane.b32.xlu1 %v359_v3, %s701_s23 }
 0x1b3   : > { %360 = vrot.lane.b32.xlu0 %v356_v4, %s701_s23 }
 0x1b6   : > { %317 = vrot.lane.b32.xlu1 %v831_v8, %s703_s25 }
 0x1b7   : > { %315 = vrot.lane.b32.xlu0 %v829_v7, %s703_s25 }
 0x1ba   : > { %335 = vrot.lane.b32.xlu1 %v831_v8, %s704_s26 }
 0x1bb   : > { %333 = vrot.lane.b32.xlu0 %v829_v7, %s704_s26 }
 0x220   : > { %v270_v11 = vpop.permute.xlu1 %269 }
 0x221   : > { %v268_v12 = vpop.permute.xlu0 %267 }
 0x222   : > { %v989_v13 = vsel %vm164_vm0, %v268_v12, %v270_v11  ;;  %v272_v14 = vsel %vm164_vm0, %v270_v11, %v268_v12 }
 0x223   : > { %v996_v15 = vsel %vm164_vm0, %v829_v7, %v272_v14  ;;  %295 = vst [vmem:[%s841_s15 + $0x18] sm:$0xff] %v989_v13  ;;  %277 = vrot.lane.b32.xlu1 %v989_v13, %s703_s25 }
 0x224   : > { %294 = vst [vmem:[%s841_s15 + $0x10] sm:$0xff] %v996_v15  ;;  %v363_v16 = vpop.permute.xlu1 %362 }
 0x225   : > { %v361_v17 = vpop.permute.xlu0 %360 }
 0x226   : > { %v1006_v18 = vsel %vm355_vm9, %v361_v17, %v363_v16  ;;  %v365_v19 = vsel %vm355_vm9, %v363_v16, %v361_v17 }
 0x227   : > { %v1013_v20 = vsel %vm167_vm3, %v831_v8, %v365_v19  ;;  %386 = vst [vmem:[%s841_s15 + $0x60] sm:$0xff] %v1006_v18  ;;  %298 = vrot.lane.b32.xlu1 %v989_v13, %s704_s26  ;;  %368 = vrot.lane.b32.xlu0 %v1006_v18, %s703_s25 }
 0x228   : > { %387 = vst [vmem:[%s841_s15 + $0x68] sm:$0xff] %v1013_v20  ;;  %v318_v22 = vpop.permute.xlu1 %317 }
 0x229   : > { %v316_v21 = vpop.permute.xlu0 %315 }
 0x22a   : > { %v319_v2 = vsel %vm279_vm10, %v316_v21, %v318_v22  ;;  %v320_v26 = vsel %vm279_vm10, %v318_v22, %v316_v21 }
 0x22b   : > { %370 = vrot.lane.b32.xlu1 %v1013_v20, %s703_s25  ;;  %275 = vrot.lane.b32.xlu0 %v996_v15, %s703_s25  ;;  %v322_v25 = vsel %vm833_vm4, %v831_v8, %v319_v2  ;;  %v321_v28 = vsel %vm820_vm1, %v829_v7, %v320_v26 }
 0x22c   : > { %v336_v24 = vpop.permute.xlu1 %335 }
 0x22d   : > { %v334_v23 = vpop.permute.xlu0 %333 }
 0x22e   : > { %v338_v27 = vsel %vm300_vm11, %v336_v24, %v334_v23  ;;  %v337_v30 = vsel %vm300_vm11, %v334_v23, %v336_v24 }
 0x22f   : > { %390 = vrot.lane.b32.xlu1 %v1013_v20, %s704_s26  ;;  %296 = vrot.lane.b32.xlu0 %v996_v15, %s704_s26  ;;  %v340_v29 = vsel %vm837_vm5, %v831_v8, %v338_v27  ;;  %v339_v31 = vsel %vm824_vm2, %v829_v7, %v337_v30 }
 0x233   : > { %388 = vrot.lane.b32.xlu0 %v1006_v18, %s704_s26  ;;  %325 = vrot.lane.b32.xlu1 %v322_v25, %s703_s25 }
 0x237   : > { %323 = vrot.lane.b32.xlu0 %v321_v28, %s703_s25  ;;  %343 = vrot.lane.b32.xlu1 %v340_v29, %s704_s26 }
 0x23b   : > { %341 = vrot.lane.b32.xlu0 %v339_v31, %s704_s26 }
 0x295   : > { %v278_v32 = vpop.permute.xlu1 %277 }
 0x299   : > { %v369_v33 = vpop.permute.xlu0 %368  ;;  %v299_v34 = vpop.permute.xlu1 %298 }
 0x29d   : > { %v276_v35 = vpop.permute.xlu0 %275  ;;  %v371_v36 = vpop.permute.xlu1 %370 }
 0x29e   : > { %v280_v37 = vsel %vm279_vm10, %v276_v35, %v278_v32  ;;  %v281_v38 = vsel %vm279_vm10, %v278_v32, %v276_v35  ;;  %v372_v47 = vsel %vm279_vm10, %v369_v33, %v371_v36  ;;  %v373_v48 = vsel %vm279_vm10, %v371_v36, %v369_v33 }
 0x29f   : > { %v282_v39 = vsel %vm820_vm1, %v996_v15, %v281_v38  ;;  %v283_v40 = vsel %vm833_vm4, %v989_v13, %v280_v37  ;;  %v374_v51 = vsel %vm820_vm1, %v1006_v18, %v373_v48  ;;  %v375_v52 = vsel %vm833_vm4, %v1013_v20, %v372_v47 }
 0x2a0   : > { %284 = vrot.lane.b32.xlu0 %v282_v39, %s703_s25  ;;  %286 = vrot.lane.b32.xlu1 %v283_v40, %s703_s25 }
 0x2a1   : > { %v297_v41 = vpop.permute.xlu0 %296  ;;  %v391_v42 = vpop.permute.xlu1 %390 }
 0x2a2   : > { %v301_v43 = vsel %vm300_vm11, %v297_v41, %v299_v34  ;;  %v302_v44 = vsel %vm300_vm11, %v299_v34, %v297_v41 }
 0x2a3   : > { %v304_v45 = vsel %vm837_vm5, %v989_v13, %v302_v44  ;;  %v303_v46 = vsel %vm824_vm2, %v996_v15, %v301_v43 }
 0x2a4   : > { %307 = vrot.lane.b32.xlu1 %v304_v45, %s704_s26  ;;  %305 = vrot.lane.b32.xlu0 %v303_v46, %s704_s26 }
 0x2a5   : > { %v389_v49 = vpop.permute.xlu0 %388  ;;  %v326_v50 = vpop.permute.xlu1 %325 }
 0x2a6   : > { %v392_v53 = vsel %vm300_vm11, %v389_v49, %v391_v42  ;;  %v393_v54 = vsel %vm300_vm11, %v391_v42, %v389_v49 }
 0x2a7   : > { %v395_v58 = vsel %vm837_vm5, %v1013_v20, %v393_v54  ;;  %v394_v59 = vsel %vm824_vm2, %v1006_v18, %v392_v53 }
 0x2a8   : > { %376 = vrot.lane.b32.xlu0 %v374_v51, %s703_s25  ;;  %378 = vrot.lane.b32.xlu1 %v375_v52, %s703_s25 }
 0x2a9   : > { %v324_v55 = vpop.permute.xlu0 %323  ;;  %v344_v62 = vpop.permute.xlu1 %343 }
 0x2aa   : > { %v327_v56 = vsel %vm279_vm10, %v324_v55, %v326_v50  ;;  %v328_v57 = vsel %vm279_vm10, %v326_v50, %v324_v55 }
 0x2ab   : > { %v329_v60 = vsel %vm820_vm1, %v829_v7, %v328_v57  ;;  %v330_v61 = vsel %vm833_vm4, %v831_v8, %v327_v56 }
 0x2ac   : > { %398 = vrot.lane.b32.xlu1 %v395_v58, %s704_s26  ;;  %396 = vrot.lane.b32.xlu0 %v394_v59, %s704_s26  ;;  %331 = vst [vmem:[%s841_s15 + $0x30] sm:$0xff] %v329_v60  ;;  %332 = vst [vmem:[%s841_s15 + $0x38] sm:$0xff] %v330_v61 }
 0x2ad   : > { %v342_v63 = vpop.permute.xlu0 %341 }
 0x2ae   : > { %v345_v0 = vsel %vm300_vm11, %v342_v63, %v344_v62  ;;  %v346_v3 = vsel %vm300_vm11, %v344_v62, %v342_v63 }
 0x2af   : > { %v347_v4 = vsel %vm824_vm2, %v829_v7, %v345_v0  ;;  %v348_v11 = vsel %vm837_vm5, %v831_v8, %v346_v3 }
 0x2b0   : > { %349 = vst [vmem:[%s841_s15 + $0x40] sm:$0xff] %v347_v4  ;;  %350 = vst [vmem:[%s841_s15 + $0x48] sm:$0xff] %v348_v11 }
 0x312   : > { %v285_v12 = vpop.permute.xlu0 %284  ;;  %v287_v14 = vpop.permute.xlu1 %286 }
 0x313   : > { %v288_v16 = vsel %vm279_vm10, %v285_v12, %v287_v14  ;;  %v289_v17 = vsel %vm279_vm10, %v287_v14, %v285_v12 }
 0x314   : > { %v290_v7 = vsel %vm820_vm1, %v996_v15, %v289_v17  ;;  %v291_v8 = vsel %vm833_vm4, %v989_v13, %v288_v16 }
 0x315   : > { %292 = vst [vmem:[%s841_s15] sm:$0xff] %v290_v7  ;;  %293 = vst [vmem:[%s841_s15 + $0x8] sm:$0xff] %v291_v8 }
 0x316   : > { %v306_v19 = vpop.permute.xlu0 %305  ;;  %v308_v21 = vpop.permute.xlu1 %307 }
 0x317   : > { %v309_v22 = vsel %vm300_vm11, %v306_v19, %v308_v21  ;;  %v310_v2 = vsel %vm300_vm11, %v308_v21, %v306_v19 }
 0x318   : > { %v311_v23 = vsel %vm824_vm2, %v996_v15, %v309_v22  ;;  %v312_v24 = vsel %vm837_vm5, %v989_v13, %v310_v2 }
 0x319   : > { %313 = vst [vmem:[%s841_s15 + $0x20] sm:$0xff] %v311_v23  ;;  %314 = vst [vmem:[%s841_s15 + $0x28] sm:$0xff] %v312_v24 }
 0x31a   : > { %v377_v25 = vpop.permute.xlu0 %376  ;;  %v379_v26 = vpop.permute.xlu1 %378 }
 0x31b   : > { %v380_v27 = vsel %vm279_vm10, %v377_v25, %v379_v26  ;;  %v381_v28 = vsel %vm279_vm10, %v379_v26, %v377_v25 }
 0x31c   : > { %v382_v15 = vsel %vm820_vm1, %v1006_v18, %v381_v28  ;;  %v383_v13 = vsel %vm833_vm4, %v1013_v20, %v380_v27 }
 0x31d   : > { %384 = vst [vmem:[%s841_s15 + $0x50] sm:$0xff] %v382_v15  ;;  %385 = vst [vmem:[%s841_s15 + $0x58] sm:$0xff] %v383_v13 }
 0x31e   : > { %v397_v29 = vpop.permute.xlu0 %396  ;;  %v399_v30 = vpop.permute.xlu1 %398 }
 0x31f   : > { %v400_v31 = vsel %vm300_vm11, %v397_v29, %v399_v30  ;;  %v401_v32 = vsel %vm300_vm11, %v399_v30, %v397_v29 }
 0x320   : > { %v402_v33 = vsel %vm824_vm2, %v1006_v18, %v400_v31  ;;  %v403_v5 = vsel %vm837_vm5, %v1013_v20, %v401_v32 }
 0x321   : > { %404 = vst [vmem:[%s841_s15 + $0x70] sm:$0xff] %v402_v33  ;;  %405 = vst [vmem:[%s841_s15 + $0x78] sm:$0xff] %v403_v5 }
 0x322 PF: > { %s509_s27 = sshll.u32 %s686_s9, 11  ;;  %s423_s2 = sshll.u32 %s841_s15, 4  ;;  %s424_s2 = int_to_ptr.vmem [resolvable:$true] %s423_s2 }
 0x323   : > { %s1183_s30 = scalar_lea.hbm %s1228_s1, %s509_s27  ;;  %s407_s3 = scalar_lea.sflag [#allocation4], %s127_s12 }
 0x324   : > { %s612_s4 = scalar_lea.vmem %s424_s2, 2048  ;;  %p1248_p11 = scmp.ne.s32.totalorder %s1233_s16, 0 }
 0x325   : > { %p613_p10 = scmp.ne.s32.totalorder %s424_s2, %s612_s4  ;;  %s705_s5 = smov [#allocation5]  }
 0x326   : > { %s616_s13 = sshll.u32 %s705_s5, 4  ;;  %s617_s13 = int_to_ptr.vmem [resolvable:$false] %s616_s13 }
 0x327   : > { %p614_p13 = pnand %p613_p10, %p1248_p11  ;;  %s618_s17 = scalar_lea.vmem %s617_s13, 4096 }
 0x328   : > { %p619_p3 = scmp.lt.s32.totalorder %s424_s2, %s617_s13  ;;  %p620_p5 = scmp.lt.s32.totalorder %s618_s17, %s612_s4 }
 0x329   : > { %p615_p1 = pneg %p614_p13 }
 0x32a   : > { %p621_p6 = por %p620_p5, %p619_p3 }
 0x32c   : > { %p622_p7 = pnand %p621_p6, %p615_p1 }
 0x32e   : > { %625 = shalt.err (!%p622_p7)
}
 0x32f   : > { %s626_s9 = scalar_lea.hbm %s1183_s30, 2048  ;;  %s630_s20 = scalar_lea.hbm %s1228_s1, 4096 }
 0x330   : > { %p627_p9 = scmp.ne.s32.totalorder %s1183_s30, %s626_s9  ;;  %p631_p2 = scmp.lt.u32.totalorder %s1183_s30, %s1228_s1 }
 0x331   : > { %p632_p4 = scmp.lt.u32.totalorder %s630_s20, %s626_s9  ;;  %p634_p10 = scmp.lt.u32.totalorder %s626_s9, %s1183_s30 }
 0x332   : > { %p628_p12 = pnand %p627_p9, %p1248_p11 }
 0x333   : > { %p633_p8 = por %p632_p4, %p631_p2 }
 0x334   : > { %p629_p0 = pneg %p628_p12 }
 0x335   : > { %p635_p13 = por %p634_p10, %p633_p8 }
 0x337   : > { %p636_p1 = pnand %p635_p13, %p629_p0 }
 0x339   : > { %639 = shalt.err (!%p636_p1)
}
 0x33a   : > { %514 = dma.vmem_to_hbm [thread:$0]  (%p1248_p11), %s424_s2, 2048, %s1183_s30, %s407_s3  }
 0x33b PF: > { %p526_p3 = scmp.ge.s32.totalorder %s694_s11, 2  ;;  %s435_s23 = sand.u32 1, %s674_s6  }
 0x33c   : > { %p1249_p5 = scmp.ne.s32.totalorder %s1234_s18, 0  ;;  %s436_s24 = scalar_lea.sflag [#allocation4], %s435_s23 }
 0x33e   : > { %p521_p6 = pnand %p526_p3, %p1249_p5 }
 0x340   : > { %669 = dma.done.wait (!%p521_p6), %s436_s24, 2048  }
 0x341   : > { %671 = vsyncadd (!%p521_p6), %s436_s24, 4294965248  ;;  %s15_s11 = sadd.s32 1, %s694_s11   ;;  %s1250_s6 = smov %s678_s7 }
 0x342   : > { %p12_p7 = scmp.ge.s32.totalorder %s15_s11, 4   ;;  %s1251_s7 = smov %s682_s8 }
 0x343   : > { %s1252_s8 = smov %s769_s19  ;;  %s1253_s9 = smov %s690_s10 }
 0x344   : > { %s1254_s10 = smov %s1256_s14  ;;  %14 = sbr.rel (!%p12_p7) target bundleno = 5 (0x5), region = 70 }
 0x34b   :  { %441 = vsyncpa [#allocation3], 1 }
 0x34c   :  { %443 = vsyncpa [#allocation3 + $0x1], 1 }
 0x34d   :  { %444 = vsyncpa [#allocation4], 1 }
 0x34e   :  { %446 = vsyncpa [#allocation4 + $0x1], 1 }

</bundles_post_ra>
